<compile_context>
chip_gen: v7x
topology: tpu7x:2x2x1
jax: 0.10.0
libtpu: 0.0.40
codegen_flags: <defaults>
</compile_context>

<pallas_src>
import jax
import jax.numpy as jnp
from jax.experimental import pallas as pl
from jax.experimental.pallas import tpu as pltpu


def _mul_conv1x1_kernel(w_ref, s_ref, x_ref, o_ref):
    # w_ref: (Cout, Cin)    1x1-conv weight (block index constant across the
    #                       spatial axis -> stays resident in VMEM)
    # s_ref: (1, 1, Cin)    per-(batch, channel) scale x98
    # x_ref: (1, Cin, tm)   activation tile, NCHW layout (spatial flattened)
    # o_ref: (1, Cout, tm)  output tile (masked writeback on the partial tile)
    #
    # Fold the scale into W in-kernel: W @ (s * x) == (W * s) @ x.
    # (1, Cin) broadcast over (Cout, Cin) is a lane-aligned broadcast; the
    # multiply rides in the VALU slot underneath the MXU.
    w_scaled = w_ref[...] * s_ref[0]
    o_ref[0] = jnp.dot(
        w_scaled, x_ref[0], preferred_element_type=jnp.float32
    ).astype(o_ref.dtype)


def _pick_tm(M: int) -> int:
    # >=2 spatial blocks gives DMA/compute overlap and something to shard
    # across the two v7x TensorCores, while keeping the ~0.35us per-step
    # overhead small. Spec shape M=784 -> 4 tiles of 256 (last one masked).
    if M <= 128:
        return M        # single full-extent block; nothing to pipeline
    if M <= 512:
        return 128      # 2-4 blocks of 128
    return 256


def mul_conv1x1(x93, x98, weight, *, tm=None, compute_dtype=jnp.bfloat16):
    """Fused (x98 * x93) -> Conv2d(Cin, Cout, kernel_size=1, bias=False).

    Stays in NCHW end-to-end (no input/output transposes).  The per-channel
    scale is applied inside the kernel, so the only wrapper-side work is
    no-copy reshapes and (optionally) a dtype cast.

    x93:    (N, Cin, H, W)
    x98:    (N, Cin, 1, 1)
    weight: (Cout, Cin, 1, 1)
    returns (N, Cout, H, W) in x93's dtype.
    """
    N, C, H, W = x93.shape
    Cout = weight.shape[0]
    M = H * W
    out_dtype = x93.dtype

    if compute_dtype is None:
        compute_dtype = x93.dtype
    if tm is None:
        tm = _pick_tm(M)
    # Partial last block is fine (independent spatial columns, masked store);
    # only the BlockSpec alignment rule must hold.
    assert tm == M or tm % 128 == 0, "tile must be full-extent or 128-aligned"

    # Pure reshapes (no data movement) + optional cast to the MXU dtype.
    x_2d = x93.reshape(N, C, M).astype(compute_dtype)          # (N, Cin, M)
    s_2d = x98.reshape(N, 1, C).astype(compute_dtype)          # (N, 1, Cin)
    w_2d = weight.reshape(Cout, C).astype(compute_dtype)       # (Cout, Cin)

    grid = (N, pl.cdiv(M, tm))

    bytes_accessed = (
        x_2d.size * x_2d.dtype.itemsize
        + s_2d.size * s_2d.dtype.itemsize
        + w_2d.size * w_2d.dtype.itemsize
        + N * Cout * M * jnp.dtype(out_dtype).itemsize
    )
    cost = pl.CostEstimate(
        flops=2 * N * Cout * C * M,
        bytes_accessed=bytes_accessed,
        transcendentals=0,
    )

    out = pl.pallas_call(
        _mul_conv1x1_kernel,
        out_shape=jax.ShapeDtypeStruct((N, Cout, M), out_dtype),
        grid_spec=pltpu.PrefetchScalarGridSpec(
            num_scalar_prefetch=0,
            grid=grid,
            in_specs=[
                # weight: same block for every grid step -> resident in VMEM
                pl.BlockSpec((Cout, C), lambda n, i: (0, 0)),
                # per-batch channel scale (tiny)
                pl.BlockSpec((1, 1, C), lambda n, i: (n, 0, 0)),
                # activation tile: full channel column, tm spatial positions
                pl.BlockSpec((1, C, tm), lambda n, i: (n, 0, i)),
            ],
            out_specs=pl.BlockSpec((1, Cout, tm), lambda n, i: (n, 0, i)),
        ),
        compiler_params=pltpu.CompilerParams(
            dimension_semantics=("parallel", "parallel")
        ),
        cost_estimate=cost,
    )(w_2d, s_2d, x_2d)

    # (N, Cout, H*W) -> (N, Cout, H, W): pure reshape, no data movement.
    return out.reshape(N, Cout, H, W)


if __name__ == "__main__":
    key = jax.random.PRNGKey(0)
    k1, k2, k3 = jax.random.split(key, 3)

    # Small shapes consistent with the module (real module: 1 x 696 x 28 x 28).
    N, C, H, W = 2, 72, 16, 16
    Cout = C
    x93 = jax.random.normal(k1, (N, C, H, W), dtype=jnp.float32)
    x98 = jax.random.normal(k2, (N, C, 1, 1), dtype=jnp.float32)

    # Deterministic Conv2d(C, C, 1, bias=False) weight init (PyTorch default).
    bound = 1.0 / (C ** 0.5)
    weight = jax.random.uniform(
        k3, (Cout, C, 1, 1), dtype=jnp.float32, minval=-bound, maxval=bound
    )

    # Reference: 1x1 conv of (x98 * x93), pure JAX, f32.
    ref = jnp.einsum("oc,nchw->nohw", weight.reshape(Cout, C), x98 * x93)

    # f32 compute path: tight check of the kernel math (tiling, scale fold).
    out_f32 = jax.block_until_ready(
        mul_conv1x1(x93, x98, weight, compute_dtype=jnp.float32)
    )
    assert out_f32.shape == (N, Cout, H, W)
    assert jnp.allclose(out_f32, ref, atol=1e-3, rtol=1e-3)

    # Default bf16 compute path (MXU-native); looser tolerance vs f32 ref.
    out_bf16 = jax.block_until_ready(mul_conv1x1(x93, x98, weight))
    assert out_bf16.shape == (N, Cout, H, W)
    assert jnp.allclose(out_bf16, ref, atol=5e-2, rtol=5e-2)

    print("KERNEL_OK")
</pallas_src>

<mosaic_0001>
module attributes {stable_mosaic.version = 11 : i64} {
  func.func @_mul_conv1x1_kernel(%arg0: i32, %arg1: i32, %arg2: memref<72x72xf32, #tpu.memory_space<vmem>>, %arg3: memref<1x1x72xf32, #tpu.memory_space<vmem>>, %arg4: memref<1x72x128xf32, #tpu.memory_space<vmem>>, %arg5: memref<1x72x128xf32, #tpu.memory_space<vmem>>) attributes {dimension_semantics = [#tpu.dimension_semantics<parallel>, #tpu.dimension_semantics<parallel>], iteration_bounds = array<i64: 2, 2>, scalar_prefetch = 0 : i64, scratch_operands = 0 : i64, tpu.core_type = #tpu.core_type<tc>, window_params = [{pipeline_mode = #tpu.pipeline_mode<synchronous>, transform_indices = @transform_0, window_bounds = array<i64: 72, 72>}, {transform_indices = @transform_1, window_bounds = array<i64: 1, 1, 72>}, {transform_indices = @transform_2, window_bounds = array<i64: 1, 72, 128>}, {transform_indices = @transform_3, window_bounds = array<i64: 1, 72, 128>}]} {
    %c0 = arith.constant 0 : index
    %c0_0 = arith.constant 0 : index
    %0 = vector.load %arg2[%c0, %c0_0] : memref<72x72xf32, #tpu.memory_space<vmem>>, vector<72x72xf32>
    %c0_1 = arith.constant 0 : index
    %c0_2 = arith.constant 0 : index
    %c0_3 = arith.constant 0 : index
    %1 = vector.load %arg3[%c0_1, %c0_2, %c0_3] : memref<1x1x72xf32, #tpu.memory_space<vmem>>, vector<1x1x72xf32>
    %2 = vector.shape_cast %1 : vector<1x1x72xf32> to vector<1x72xf32>
    %3 = vector.broadcast %2 : vector<1x72xf32> to vector<72x72xf32>
    %4 = arith.mulf %0, %3 : vector<72x72xf32>
    %c0_4 = arith.constant 0 : index
    %c0_5 = arith.constant 0 : index
    %c0_6 = arith.constant 0 : index
    %5 = vector.load %arg4[%c0_4, %c0_5, %c0_6] : memref<1x72x128xf32, #tpu.memory_space<vmem>>, vector<1x72x128xf32>
    %6 = vector.shape_cast %5 : vector<1x72x128xf32> to vector<72x128xf32>
    %cst = arith.constant dense<0.000000e+00> : vector<72x128xf32>
    %7 = tpu.matmul %4, %6, %cst {dimension_numbers = #tpu.dot_dimension_numbers<[1], [0], [0], [1], [0, 0, 1, 1], [], []>} : vector<72x72xf32>, vector<72x128xf32>, vector<72x128xf32> -> vector<72x128xf32>
    %c0_7 = arith.constant 0 : index
    %c0_8 = arith.constant 0 : index
    %c0_9 = arith.constant 0 : index
    %8 = vector.load %arg5[%c0_7, %c0_8, %c0_9] : memref<1x72x128xf32, #tpu.memory_space<vmem>>, vector<1x72x128xf32>
    %9 = vector.shape_cast %8 : vector<1x72x128xf32> to vector<72x128xf32>
    %10 = vector.shape_cast %7 : vector<72x128xf32> to vector<1x72x128xf32>
    tpu.vector_store %arg5[%c0_7, %c0_8, %c0_9], %10 {strides = array<i32>} : memref<1x72x128xf32, #tpu.memory_space<vmem>>, vector<1x72x128xf32>,
    return
  }
  func.func @transform_0(%arg0: i32, %arg1: i32) -> (i32, i32) {
    %c0_i32 = arith.constant 0 : i32
    %c0_i32_0 = arith.constant 0 : i32
    %c0_i32_1 = arith.constant 0 : i32
    return %c0_i32, %c0_i32_0 : i32, i32
  }
  func.func @transform_1(%arg0: i32, %arg1: i32) -> (i32, i32, i32) {
    %c0_i32 = arith.constant 0 : i32
    %c0_i32_0 = arith.constant 0 : i32
    %c0_i32_1 = arith.constant 0 : i32
    return %arg0, %c0_i32, %c0_i32_0 : i32, i32, i32
  }
  func.func @transform_2(%arg0: i32, %arg1: i32) -> (i32, i32, i32) {
    %c0_i32 = arith.constant 0 : i32
    %c0_i32_0 = arith.constant 0 : i32
    return %arg0, %c0_i32, %arg1 : i32, i32, i32
  }
  func.func @transform_3(%arg0: i32, %arg1: i32) -> (i32, i32, i32) {
    %c0_i32 = arith.constant 0 : i32
    %c0_i32_0 = arith.constant 0 : i32
    return %arg0, %c0_i32, %arg1 : i32, i32, i32
  }
}

</mosaic_0001>

<bundles_post_ra>
// kernel: tpu_custom_call.1
= control target key start
LH: loop header
LB: loop body
LE: loop exit
PB: predicated region body
PF: predicated region fallthrough
CT: control target
= control target key end

     0   :  { %s1250_s0 = inlined_call_operand.hbm [shape: f32[72,72], index: 0, kind: input, shape index: {}]   ;;  %s1251_s1 = inlined_call_operand.vmem [shape: f32[2,1,72], index: 1, kind: input, shape index: {}]   ;;  %s1252_s2 = inlined_call_operand.hbm [shape: f32[2,72,256], index: 2, kind: input, shape index: {}]   ;;  %s1253_s3 = inlined_call_operand.hbm [shape: f32[2,72,256], index: 3, kind: output, shape index: {}]  }
   0x1   :  { %1263 = sst [smem:[#allocation12_spill]] %s1250_s0 }
   0x2   :  { %8 = vsyncpa [#allocation3], 0 }
   0x3   :  { %9 = vsyncpa [#allocation6], 0 }
   0x4   :  { %11 = vsyncpa [#allocation6 + $0x1], 0 }
   0x5   :  { %12 = vsyncpa [#allocation4], 0 }
   0x6   :  { %14 = vsyncpa [#allocation4 + $0x1], 0  ;;  %s942_s12 = smov 0   ;;  %s944_s13 = smov 0  }
   0x7   :  { %s946_s14 = smov 0   ;;  %s948_s15 = smov 0  }
   0x8   :  { %s950_s16 = smov 0   ;;  %s952_s17 = smov 0  }
   0x9   :  { %s954_s18 = smov 0   ;;  %s956_s19 = smov 0  }
   0xa LB: > { %s540_s20 = sadd.s32 4294967295, %s908_s19   ;;  %s541_s21 = sadd.s32 4294967294, %s908_s19   ;;  %s908_s19 = sphi %s956_s19, %s20_s19   ;;  %s904_s18 = sphi %s954_s18, %s1290_s18   ;;  %s900_s17 = sphi %s952_s17, %s1289_s17   ;;  %s896_s16 = sphi %s950_s16, %s1288_s16   ;;  %s892_s15 = sphi %s948_s15, %s1287_s15   ;;  %s888_s14 = sphi %s946_s14, %s1286_s14   ;;  %s884_s13 = sphi %s944_s13, %s1285_s13   ;;  %s880_s12 = sphi %s942_s12, %s1284_s12  }
   0xb   : > { %p95_p0 = scmp.ne.s32.totalorder %s888_s14, %s884_s13  ;;  %p96_p1 = scmp.eq.s32.totalorder %s908_s19, 0 }
   0xc   : > { %p101_p2 = scmp.ne.s32.totalorder %s884_s13, %s880_s12  ;;  %p990_p3 = scmp.eq.s32.totalorder %s540_s20, 0 }
   0xd   : > { %p127_p4 = scmp.eq.s32.totalorder %s540_s20, 3  ;;  %p994_p5 = por %p96_p1, %p95_p0 }
   0xe   : > { %s1264_s23 = scalar_select %p990_p3, 1, 0 }
   0xf   : > { %p133_p6 = scmp.eq.s32.totalorder %s541_s21, 3  ;;  %p1000_p7 = por %p990_p3, %p101_p2 }
  0x10   : > { %p1004_p8 = por %p127_p4, %p95_p0  ;;  %p542_p10 = scmp.ge.s32.totalorder %s908_s19, 1 }
  0x11   : > { %s1266_s25 = scalar_select %p1000_p7, 1, 0 }
  0x12   : > { %s1267_s26 = scalar_select %p1004_p8, 1, 0 }
  0x13   : > { %p1008_p9 = por %p133_p6, %p101_p2  ;;  %p140_p11 = scmp.lt.s32.totalorder %s908_s19, 5 }
  0x14   : > { %s910_s29 = smov [#allocation2]   ;;  %p671_p0 = scmp.lt.s32.totalorder %s908_s19, 4 }
  0x15   : > { %s1268_s27 = scalar_select %p1008_p9, 1, 0 }
  0x16   : > { %p1014_p12 = pnand %p542_p10, %p140_p11  ;;  %s152_s30 = sshll.u32 %s910_s29, 4  ;;  %s153_s30 = int_to_ptr.vmem [resolvable:$true] %s152_s30 }
  0x17   : > { %p1029_p2 = pnand %p671_p0, %p994_p5  ;;  %s1272_s0 = sld [smem:[#allocation12_spill]] }
  0x18   : > { %s1269_s28 = scalar_select %p1014_p12, 1, 0 }
  0x19   : > { %p658_p13 = pneg %p1014_p12 }
  0x1a   : > { %s1271_s5 = scalar_select %p1029_p2, 1, 0 }
  0x1b   : > { %p1023_p1 = pnand %p658_p13, %p990_p3 }
  0x1d   : > { %s748_s8 = scalar_lea.hbm %s1272_s0, 1152  ;;  %p750_p6 = pneg %p1023_p1 }
  0x1e   : > { %p749_p4 = scmp.ne.s32.totalorder %s1272_s0, %s748_s8  ;;  %p755_p13 = scmp.lt.u32.totalorder %s748_s8, %s1272_s0 }
  0x20   : > { %p751_p10 = pnand %p750_p6, %p749_p4 }
  0x22   : > { %p752_p11 = pneg %p751_p10 }
  0x24   : > { %p757_p5 = pnand %p755_p13, %p752_p11 }
  0x26   : > { %760 = shalt.err (!%p757_p5)
}
  0x27   : > { %s761_s21 = scalar_lea.vmem %s153_s30, 1152  ;;  %p769_p7 = scmp.lt.s32.totalorder %s153_s30, %s153_s30 }
  0x28   : > { %p762_p0 = scmp.ne.s32.totalorder %s153_s30, %s761_s21  ;;  %p770_p3 = scmp.lt.s32.totalorder %s761_s21, %s761_s21 }
  0x2a   : > { %p764_p9 = pnand %p762_p0, %p750_p6  ;;  %p771_p12 = por %p770_p3, %p769_p7 }
  0x2c   : > { %p765_p8 = pneg %p764_p9 }
  0x2e   : > { %p772_p2 = pnand %p771_p12, %p765_p8 }
  0x30   : > { %775 = shalt.err (!%p772_p2)
}
  0x31   : > { %s1260_s24 = smov 128   ;;  %s1261_s29 = smov 8  }
  0x32   : > { %661 = dma.hbm_to_vmem [thread:$0]  (!%p1023_p1), %s1272_s0, 1152, %s153_s30, [#allocation3], %s1260_s24, %s1260_s24, %s1261_s29  }
  0x33   : > { %s29_s8 = sadd.s32 1, %s900_s17  ;;  %s32_s9 = sadd.s32 1, %s904_s18 }
  0x34   : > { %p30_p3 = scmp.ge.s32.totalorder %s29_s8, 2  ;;  %s172_s10 = sand.u32 1, %s888_s14  }
  0x35   : > { %s647_s11 = smul.u32 18, %s904_s18  ;;  %p1274_p12 = scmp.ne.s32.totalorder %s1271_s5, 0 }
  0x36   : > { %s1292_s8 = smov (%p30_p3, %s29_s8), 0  ;;  %s1294_s9 = smov (!%p30_p3, %s32_s9), %s904_s18 }
  0x37   : > { %1273 = sst [smem:[#allocation11_spill]] %s1292_s8  ;;  %s84_s20 = ssub.s32 %s900_s17, %s1292_s8 }
  0x38   : > { %p34_p7 = scmp.ge.s32.totalorder %s1294_s9, 2  ;;  %s646_s4 = smul.u32 72, %s172_s10 }
  0x39   : > { %s181_s21 = sadd.s32 %s900_s17, %s647_s11  ;;  %s1076_s11 = scalar_lea.sflag [#allocation6], %s172_s10 }
  0x3a   : > { %s1296_s9 = smov (%p34_p7, %s1294_s9), 0  ;;  %s545_s6 = sshll.u32 %s181_s21, 7 }
  0x3b   : > { %s83_s30 = ssub.s32 %s904_s18, %s1296_s9  ;;  %s1069_s24 = scalar_lea.hbm %s1252_s2, %s545_s6 }
  0x3c   : > { %s1071_s29 = sor.u32 %s84_s20, %s83_s30  ;;  %s176_s0 = scalar_lea.vmem [#allocation5], %s646_s4 }
  0x3d   : > { %s184_s8 = sshll.u32 %s176_s0, 4  ;;  %p86_p8 = scmp.eq.s32.totalorder %s1071_s29, 0  ;;  %s1074_s8 = int_to_ptr.vmem [resolvable:$true] %s184_s8 }
  0x3e   : > { %s776_s21 = scalar_lea.hbm %s1069_s24, 1152  ;;  %p778_p1 = pneg %p1274_p12 }
  0x3f   : > { %p777_p9 = scmp.ne.s32.totalorder %s1069_s24, %s776_s21  ;;  %s781_s20 = scalar_lea.hbm %s1252_s2, 4608 }
  0x40   : > { %p782_p6 = scmp.lt.u32.totalorder %s1069_s24, %s1252_s2  ;;  %p783_p10 = scmp.lt.u32.totalorder %s781_s20, %s776_s21 }
  0x41   : > { %p779_p2 = pnand %p778_p1, %p777_p9  ;;  %p785_p13 = scmp.lt.u32.totalorder %s776_s21, %s1069_s24 }
  0x42   : > { %p784_p11 = por %p783_p10, %p782_p6 }
  0x43   : > { %p780_p4 = pneg %p779_p2 }
  0x44   : > { %p786_p5 = por %p785_p13, %p784_p11 }
  0x46   : > { %p787_p0 = pnand %p786_p5, %p780_p4 }
  0x48   : > { %790 = shalt.err (!%p787_p0)
}
  0x49   : > { %s791_s0 = scalar_lea.vmem %s1074_s8, 1152  ;;  %s913_s10 = smov [#allocation5]  }
  0x4a   : > { %p792_p3 = scmp.ne.s32.totalorder %s1074_s8, %s791_s0  ;;  %s796_s7 = sshll.u32 %s913_s10, 4  ;;  %s797_s7 = int_to_ptr.vmem [resolvable:$false] %s796_s7 }
  0x4b   : > { %s798_s22 = scalar_lea.vmem %s797_s7, 2304  ;;  %p799_p2 = scmp.lt.s32.totalorder %s1074_s8, %s797_s7 }
  0x4c   : > { %p794_p7 = pnand %p792_p3, %p778_p1  ;;  %p800_p6 = scmp.lt.s32.totalorder %s798_s22, %s791_s0 }
  0x4e   : > { %p795_p9 = pneg %p794_p7  ;;  %p801_p10 = por %p800_p6, %p799_p2 }
  0x50   : > { %p802_p11 = pnand %p801_p10, %p795_p9 }
  0x52   : > { %805 = shalt.err (!%p802_p11)
}
  0x53   : > { %s914_s21 = smov 256   ;;  %s1275_s6 = smov 8  }
  0x54   : > { %s1276_s20 = smov 128   ;;  %s1277_s30 = sadd.s32 1, %s888_s14 }
  0x55   : > { %665 = dma.hbm_to_vmem [thread:$0]  (!%p1274_p12), %s1069_s24, 1152, %s1074_s8, %s1076_s11, %s914_s21, %s1276_s20, %s1275_s6  }
  0x56   : > { %s1111_s4 = scalar_select %p86_p8, %s888_s14, %s1277_s30  }
  0x57   : > { %p1278_p1 = scmp.ne.s32.totalorder %s1269_s28, 0 }
  0x58   : > { %p1279_p4 = scmp.ne.s32.totalorder (!%p1278_p1), %s1264_s23, 0 }
  0x59   : > { %196 = sbr.rel (%p1278_p1) target bundleno = 366 (0x16e), region = 32 }
  0x60   : > { %867 = dma.done.wait (%p1279_p4), [#allocation3], 1152  }
  0x61   : > { %869 = vsyncadd (%p1279_p4), [#allocation3], 4294966144  ;;  %s1120_s5 = sand.u32 1, %s884_s13   ;;  %p1280_p8 = scmp.ne.s32.totalorder %s1266_s25, 0 }
  0x62   : > { %s648_s24 = smul.u32 72, %s1120_s5  ;;  %s203_s29 = scalar_lea.sflag [#allocation6], %s1120_s5 }
  0x64   : > { %s1126_s8 = scalar_lea.vmem [#allocation5], %s648_s24 }
  0x65   : > { %871 = dma.done.wait (%p1280_p8), %s203_s29, 1152  }
  0x66   : > { %873 = vsyncadd (%p1280_p8), %s203_s29, 4294966144  ;;  %v915_v0 = vmov 0.0|0.0   ;;  %vm916_vm0 = vmmov 0   ;;  %v917_v1 = vmov 0.0   ;;  %v260_v2 = vld [vmem:[%s1126_s8] sm:$0xff]  ;;  %v261_v3 = vld [vmem:[%s1126_s8 + $0x8] sm:$0xff] }
  0x67   : > { %624 = vmatprep.subr.bf16.mxu0 %v915_v0  ;;  %636 = vmatprep.subr.bf16.mxu1 %v915_v0  ;;  %v262_v4 = vld [vmem:[%s1126_s8 + $0x10] sm:$0xff]  ;;  %v625_v5 = vpack.c.bf16 %v261_v3, %v260_v2  ;;  %v263_v6 = vld [vmem:[%s1126_s8 + $0x18] sm:$0xff]  ;;  %p232_p12 = scmp.lt.s32.totalorder %s896_s16, 1  ;;  %v264_v8 = vld [vmem:[%s1126_s8 + $0x20] sm:$0xff]  ;;  %vm269_vm1 = vcmask 588800   ;;  %s1177_s0 = scalar_lea.vmem [#allocation7], %s648_s24 }
  0x68   : > { %597 = vmatprep.mubr.msk.f32.mxu0 %vm916_vm0, %v917_v1  ;;  %612 = vmatprep.mubr.msk.f32.mxu1 %vm916_vm0, %v917_v1  ;;  %v628_v7 = vpack.c.bf16 %v263_v6, %v262_v4  ;;  %v265_v9 = vld [vmem:[%s1126_s8 + $0x28] sm:$0xff]  ;;  %v266_v11 = vld [vmem:[%s1126_s8 + $0x30] sm:$0xff]  ;;  %v267_v12 = vld [vmem:[%s1126_s8 + $0x38] sm:$0xff]  ;;  %s649_s10 = smul.u32 18, %s896_s16  ;;  %s431_s22 = sshll.u32 %s1177_s0, 4  ;;  %s1188_s22 = int_to_ptr.vmem [resolvable:$true] %s431_s22 }
  0x69   : > { %626 = vmatpush3.bf16.msra.mxu0 %v625_v5  ;;  %641 = vmatpush3.bf16.msra.mxu1 %v625_v5  ;;  %s233_s23 = scalar_select %p232_p12, %s896_s16, 1  ;;  %v631_v10 = vpack.c.bf16 %v265_v9, %v264_v8  ;;  %v634_v13 = vpack.c.bf16 %v267_v12, %v266_v11  ;;  %v235_v14 = vld [vmem:[#allocation2] sm:$0xff]  ;;  %v240_v16 = vld [vmem:[#allocation2 + $0x28] sm:$0xff]  ;;  %v241_v21 = vld [vmem:[#allocation2 + $0x30] sm:$0xff] }
  0x6a   : > { %627 = vmatprep.subr.bf16.mxu0 %v915_v0  ;;  %637 = vmatprep.subr.bf16.mxu1 %v915_v0  ;;  %v268_v17 = vld [vmem:[%s1126_s8 + $0x40] sm:$0xff]  ;;  %v242_v25 = vld [vmem:[#allocation2 + $0x38] sm:$0xff]  ;;  %v243_v29 = vld [vmem:[#allocation2 + $0x40] sm:$0xff]  ;;  %s428_s7 = sadd.s32 %s892_s15, %s649_s10  ;;  %s417_s20 = scalar_lea.sflag [#allocation4], %s1120_s5 }
  0x6b   : > { %s234_s11 = scalar_lea.vmem %s1251_s1, %s233_s23  ;;  %v236_v20 = vld [vmem:[#allocation2 + $0x8] sm:$0xff]  ;;  %v237_v24 = vld [vmem:[#allocation2 + $0x10] sm:$0xff]  ;;  %v238_v28 = vld [vmem:[#allocation2 + $0x18] sm:$0xff]  ;;  %s558_s21 = sshll.u32 %s428_s7, 7 }
  0x6c   : > { %v548_v15 = vld [vmem:[%s234_s11] ss:$0 sm:$0xff]  ;;  %s1195_s6 = scalar_lea.hbm %s1253_s3, %s558_s21  ;;  %s806_s30 = scalar_lea.vmem %s1188_s22, 1152 }
  0x6d   : > { %629 = vmatpush3.bf16.msra.mxu0 %v628_v7  ;;  %642 = vmatpush3.bf16.msra.mxu1 %v628_v7  ;;  %v251_v18 = vmul.f32 %v548_v15, %v235_v14  ;;  %v256_v19 = vmul.f32 %v548_v15, %v240_v16  ;;  %v252_v22 = vmul.f32 %v548_v15, %v236_v20  ;;  %v239_v32 = vld [vmem:[#allocation2 + $0x20] sm:$0xff]  ;;  %p807_p13 = scmp.ne.s32.totalorder %s1188_s22, %s806_s30  ;;  %p1281_p5 = scmp.ne.s32.totalorder %s1267_s26, 0 }
  0x6e   : > { %630 = vmatprep.subr.bf16.mxu0 %v915_v0  ;;  %638 = vmatprep.subr.bf16.mxu1 %v915_v0  ;;  %v257_v23 = vmul.f32 %v548_v15, %v241_v21  ;;  %v253_v26 = vmul.f32 %v548_v15, %v237_v24  ;;  %v258_v27 = vmul.f32 %v548_v15, %v242_v25  ;;  %s918_s24 = smov [#allocation7]  }
  0x6f   : > { %v254_v30 = vmul.f32 %v548_v15, %v238_v28  ;;  %v259_v31 = vmul.f32 %v548_v15, %v243_v29  ;;  %v255_v33 = vmul.f32 %v548_v15, %v239_v32  ;;  %p808_p0 = pnand %p807_p13, %p1281_p5  ;;  %s810_s29 = sshll.u32 %s918_s24, 4  ;;  %s811_s29 = int_to_ptr.vmem [resolvable:$false] %s810_s29 }
  0x70   : > { %s812_s8 = scalar_lea.vmem %s811_s29, 2304  ;;  %p813_p7 = scmp.lt.s32.totalorder %s1188_s22, %s811_s29 }
  0x71   : > { %632 = vmatpush3.bf16.msra.mxu0 %v631_v10  ;;  %643 = vmatpush3.bf16.msra.mxu1 %v631_v10  ;;  %p809_p3 = pneg %p808_p0  ;;  %p814_p9 = scmp.lt.s32.totalorder %s812_s8, %s806_s30 }
  0x72   : > { %633 = vmatprep.subr.bf16.mxu0 %v915_v0  ;;  %639 = vmatprep.subr.bf16.mxu1 %v915_v0 }
  0x73   : > { %p815_p2 = por %p814_p9, %p813_p7 }
  0x75   : > { %635 = vmatpush3.bf16.msra.mxu0 %v634_v13  ;;  %644 = vmatpush3.bf16.msra.mxu1 %v634_v13  ;;  %p816_p6 = pnand %p815_p2, %p809_p3 }
  0x76   : > { %595 = vmatprep.subr.mxu0 %v917_v1  ;;  %640 = vmatprep.subr.mxu1 %v917_v1 }
  0x79   : > { %596 = vmatpush3.msra.mxu0 %v268_v17  ;;  %645 = vmatpush3.msra.mxu1 %v268_v17 }
  0x7a   : > { %598 = vmatmul.mubr.msk.f32.vlgmr.msra.gmra.mrb[0].mxu0 %vm269_vm1, %v251_v18  ;;  %613 = vmatmul.mubr.msk.f32.vlgmr.msra.gmra.mrb[0].mxu1 %vm269_vm1, %v256_v19 }
  0x7b   : > { %600 = vmatprep.mubr.msk.f32.mxu0 %vm916_vm0, %v917_v1  ;;  %615 = vmatprep.mubr.msk.f32.mxu1 %vm916_vm0, %v917_v1 }
  0x7e   : > { %601 = vmatmul.mubr.msk.f32.gmra.mrb[2].mxu0 %vm269_vm1, %v252_v22  ;;  %616 = vmatmul.mubr.msk.f32.gmra.mrb[2].mxu1 %vm269_vm1, %v257_v23 }
  0x7f   : > { %603 = vmatprep.mubr.msk.f32.mxu0 %vm916_vm0, %v917_v1  ;;  %618 = vmatprep.mubr.msk.f32.mxu1 %vm916_vm0, %v917_v1 }
  0x82   : > { %604 = vmatmul.mubr.msk.f32.gmra.mrb[4].mxu0 %vm269_vm1, %v253_v26  ;;  %619 = vmatmul.mubr.msk.f32.gmra.mrb[4].mxu1 %vm269_vm1, %v258_v27 }
  0x83   : > { %606 = vmatprep.mubr.msk.f32.mxu0 %vm916_vm0, %v917_v1  ;;  %621 = vmatprep.mubr.msk.f32.mxu1 %vm916_vm0, %v917_v1 }
  0x86   : > { %607 = vmatmul.mubr.msk.f32.gmra.mrb[6].mxu0 %vm269_vm1, %v254_v30  ;;  %622 = vmatmul.mubr.msk.f32.gmra.mrb[6].mxu1 %vm269_vm1, %v259_v31 }
  0x87   : > { %609 = vmatprep.mubr.msk.f32.mxu0 %vm916_vm0, %v917_v1 }
  0x8a   : > { %610 = vmatmul.mubr.msk.f32.gmra.mrb[8].mxu0 %vm269_vm1, %v255_v33 }
 0x14d   : > { %v363_v34 = vpop.f32.mrb[0].mxu0  ;;  %v388_v35 = vpop.f32.mrb[0].mxu1 }
 0x14e   : > { %407 = vst [vmem:[%s1177_s0] sm:$0xff] %v363_v34  ;;  %v599_v36 = vpop.f32.mrb[1].mxu0  ;;  %412 = vst [vmem:[%s1177_s0 + $0x28] sm:$0xff] %v388_v35  ;;  %v614_v37 = vpop.f32.mrb[1].mxu1 }
 0x151   : > { %v368_v38 = vpop.f32.mrb[2].mxu0  ;;  %v393_v39 = vpop.f32.mrb[2].mxu1 }
 0x152   : > { %408 = vst [vmem:[%s1177_s0 + $0x8] sm:$0xff] %v368_v38  ;;  %v602_v40 = vpop.f32.mrb[3].mxu0  ;;  %413 = vst [vmem:[%s1177_s0 + $0x30] sm:$0xff] %v393_v39  ;;  %v617_v41 = vpop.f32.mrb[3].mxu1 }
 0x155   : > { %v373_v42 = vpop.f32.mrb[4].mxu0  ;;  %v398_v43 = vpop.f32.mrb[4].mxu1 }
 0x156   : > { %409 = vst [vmem:[%s1177_s0 + $0x10] sm:$0xff] %v373_v42  ;;  %v605_v44 = vpop.f32.mrb[5].mxu0  ;;  %414 = vst [vmem:[%s1177_s0 + $0x38] sm:$0xff] %v398_v43  ;;  %v620_v45 = vpop.f32.mrb[5].mxu1 }
 0x159   : > { %v378_v46 = vpop.f32.mrb[6].mxu0  ;;  %v403_v47 = vpop.f32.mrb[6].mxu1 }
 0x15a   : > { %410 = vst [vmem:[%s1177_s0 + $0x18] sm:$0xff] %v378_v46  ;;  %v608_v48 = vpop.f32.mrb[7].mxu0  ;;  %415 = vst [vmem:[%s1177_s0 + $0x40] sm:$0xff] %v403_v47  ;;  %v623_v49 = vpop.f32.mrb[7].mxu1 }
 0x15d   : > { %v383_v50 = vpop.f32.mrb[8].mxu0 }
 0x15e   : > { %411 = vst [vmem:[%s1177_s0 + $0x20] sm:$0xff] %v383_v50  ;;  %v611_v51 = vpop.f32.mrb[9].mxu0 }
 0x15f   : > { %819 = shalt.err (!%p816_p6)
}
 0x160   : > { %s820_s23 = scalar_lea.hbm %s1195_s6, 1152  ;;  %s824_s11 = scalar_lea.hbm %s1253_s3, 4608 }
 0x161   : > { %p821_p10 = scmp.ne.s32.totalorder %s1195_s6, %s820_s23  ;;  %p825_p4 = scmp.lt.u32.totalorder %s1195_s6, %s1253_s3 }
 0x162   : > { %p826_p8 = scmp.lt.u32.totalorder %s824_s11, %s820_s23  ;;  %p828_p13 = scmp.lt.u32.totalorder %s820_s23, %s1195_s6 }
 0x163   : > { %p822_p11 = pnand %p821_p10, %p1281_p5 }
 0x164   : > { %p827_p12 = por %p826_p8, %p825_p4 }
 0x165   : > { %p823_p1 = pneg %p822_p11 }
 0x166   : > { %p829_p0 = por %p828_p13, %p827_p12 }
 0x168   : > { %p830_p3 = pnand %p829_p0, %p823_p1 }
 0x16a   : > { %833 = shalt.err (!%p830_p3)
}
 0x16b   : > { %s919_s7 = smov 128   ;;  %s920_s21 = smov 256  }
 0x16c   : > { %s921_s15 = smov 8  }
 0x16d   : > { %656 = dma.vmem_to_hbm [thread:$0]  (%p1281_p5), %s1188_s22, 1152, %s1195_s6, %s417_s20, %s919_s7, %s920_s21, %s921_s15  }
 0x16e PF: > { %p673_p7 = scmp.ge.s32.totalorder %s908_s19, 2  ;;  %s446_s16 = sand.u32 1, %s880_s12  }
 0x16f   : > { %p1282_p9 = scmp.ne.s32.totalorder %s1268_s27, 0  ;;  %s447_s30 = scalar_lea.sflag [#allocation4], %s446_s16 }
 0x171   : > { %p667_p2 = pnand %p673_p7, %p1282_p9 }
 0x173   : > { %875 = dma.done.wait (!%p667_p2), %s447_s30, 1152  }
 0x174   : > { %877 = vsyncadd (!%p667_p2), %s447_s30, 4294966144  ;;  %s20_s19 = sadd.s32 1, %s908_s19   ;;  %s1283_s26 = sld [smem:[#allocation11_spill]] }
 0x175   : > { %p17_p6 = scmp.ge.s32.totalorder %s20_s19, 6   ;;  %s1284_s12 = smov %s884_s13 }
 0x176   : > { %s1285_s13 = smov %s888_s14  ;;  %s1286_s14 = smov %s1111_s4 }
 0x177   : > { %s1287_s15 = smov %s900_s17  ;;  %s1288_s16 = smov %s904_s18 }
 0x178   : > { %s1290_s18 = smov %s1296_s9  ;;  %19 = sbr.rel (!%p17_p6) target bundleno = 10 (0xa), region = 85 }
 0x17a   : > { %s1289_s17 = smov %s1283_s26 }
 0x17f   :  { %452 = vsyncpa [#allocation3], 1 }
 0x180   :  { %454 = vsyncpa [#allocation3 + $0x1], 1 }
 0x181   :  { %455 = vsyncpa [#allocation6], 1 }
 0x182   :  { %457 = vsyncpa [#allocation6 + $0x1], 1 }
 0x183   :  { %458 = vsyncpa [#allocation4], 1 }
 0x184   :  { %460 = vsyncpa [#allocation4 + $0x1], 1 }

</bundles_post_ra>
